<compile_context>
chip_gen: v7x
topology: tpu7x:2x2x1
jax: 0.10.0
libtpu: 0.0.40
codegen_flags: <defaults>
</compile_context>

<pallas_src>
import functools

import jax
import jax.numpy as jnp
from jax import lax
from jax.experimental import pallas as pl
from jax.experimental.pallas import tpu as pltpu

_LANES = 128


@functools.lru_cache(maxsize=None)
def _swap_shifts():
    """Probe pltpu.roll's rotation direction once per process (cached).

    Returns (s_fwd, s_bwd) such that
      pltpu.roll(x, s_fwd, axis=-1)[..., j] == x[..., (j + 2) % 128]
      pltpu.roll(x, s_bwd, axis=-1)[..., j] == x[..., (j - 2) % 128]
    """

    def probe(x_ref, o_ref):
        o_ref[...] = pltpu.roll(x_ref[...], 1, axis=1)

    x = jnp.tile(jnp.arange(_LANES, dtype=jnp.float32)[None, :], (8, 1))
    y = pl.pallas_call(
        probe, out_shape=jax.ShapeDtypeStruct((8, _LANES), jnp.float32))(x)
    jnp_like = bool(y[0, 0] == float(_LANES - 1))  # jnp.roll convention
    return (_LANES - 2, 2) if jnp_like else (2, _LANES - 2)


def _smooth_l1(l, beta):
    if beta > 0.0:
        # (l * l) * (0.5 / beta): precomputed constant, no per-element divide.
        return jnp.where(l < beta, (l * l) * (0.5 / beta), l - 0.5 * beta)
    # beta == 0: the quadratic branch is never selected (these losses are >= 0).
    return l


def _bounded_iou_kernel(*refs, beta, eps, rem, tm, shifts, has_weight,
                        reduce_only):
    """One (tm, 128) lane-interleaved block: lanes 4k..4k+3 = [x1,y1,x2,y2]."""
    if has_weight:
        p_ref, t_ref, w_ref, out_ref = refs
    else:
        p_ref, t_ref, out_ref = refs

    p = p_ref[...]
    t = t_ref[...]

    lane = lax.broadcasted_iota(jnp.int32, (tm, _LANES), 1)
    is_ctr = (lane & 3) < 2          # lanes holding x1 / y1 of each box
    s_fwd, s_bwd = shifts

    # Partner coordinate of the same box (lane j <-> lane j ^ 2), built with
    # XLU rotations so no wrapper-side transpose / deinterleave is needed.
    def swap(x):
        return jnp.where(is_ctr,
                         pltpu.roll(x, s_fwd, axis=1),
                         pltpu.roll(x, s_bwd, axis=1))

    p_sw = swap(p)
    t_sw = swap(t)

    # --- centre-offset losses (meaningful at lanes 4k, 4k+1: dx, dy) --------
    d = 0.5 * jnp.abs((t + t_sw) - (p + p_sw))     # |target_ctr - pred_ctr|
    tgt_wh = t_sw - t + 1.0                        # target w (x lanes) / h (y)
    two_d = d + d
    loss_ctr = 1.0 - jnp.maximum(
        (tgt_wh - two_d) / (tgt_wh + two_d + eps), 0.0)

    # --- size losses (meaningful at lanes 4k+2, 4k+3: dw, dh) ---------------
    pred_wh = p - p_sw + 1.0
    tgt_wh2 = t - t_sw + 1.0
    loss_sz = 1.0 - jnp.minimum(tgt_wh2 / (pred_wh + eps),
                                pred_wh / (tgt_wh2 + eps))

    loss = _smooth_l1(jnp.where(is_ctr, loss_ctr, loss_sz), beta)
    if has_weight:
        loss = loss * w_ref[...]

    if not reduce_only:
        out_ref[...] = loss          # 'none': per-element loss, interleaved
        return

    # 'mean'/'sum': only a tiny (8, 128) partial sum per tile leaves the
    # kernel; padding is masked on the last tile only (pl.when-gated).
    def psum(x):
        return jnp.sum(x.reshape(tm // 8, 8, _LANES), axis=0)

    i = pl.program_id(0)
    last = pl.num_programs(0) - 1

    @pl.when(i < last)
    def _():                          # interior tiles are fully valid
        out_ref[...] = psum(loss)

    @pl.when(i == last)
    def _():                          # mask the tail padding on the last tile
        row = lax.broadcasted_iota(jnp.int32, (tm, _LANES), 0)
        valid = (row * _LANES + lane) < rem
        out_ref[...] = psum(jnp.where(valid, loss, 0.0))


def bounded_iou_loss_pallas(pred, target, weight=None, *, beta=0.2, eps=1e-3,
                            reduction="mean", avg_factor=None, loss_weight=1.0,
                            tile_rows=1024):
    """tile_rows: sublane rows per grid step (tile = tile_rows * 128 values)."""
    assert reduction in ("none", "mean", "sum")
    assert pred.shape == target.shape and pred.shape[-1] == 4
    n = pred.shape[0]
    n4 = n * 4
    m = max(-(-n4 // _LANES), 1)      # rows of 128 interleaved coordinates

    def to_rows(x):
        flat = jnp.asarray(x, jnp.float32).reshape(-1)
        if m * _LANES != n4:
            flat = jnp.pad(flat, (0, m * _LANES - n4))
        return flat.reshape(m, _LANES)   # zero-copy when N % 32 == 0

    inputs = [to_rows(pred), to_rows(target)]
    has_weight = weight is not None
    if has_weight:
        w = jnp.asarray(weight, jnp.float32)
        if w.ndim == 1:
            w = w[:, None]
        # TODO(synk): a 1-D weight is broadcast to (N, 4) host-side; keeping it
        # as a single per-box lane plane would need an in-kernel 1->4 lane
        # expansion which the interleaved layout does not give us for free.
        inputs.append(to_rows(jnp.broadcast_to(w, (n, 4))))

    # Tiling: large blocks, but always >= 2 grid steps when possible so the
    # "parallel" grid axis can use both TensorCores on v7x.
    tm = max(8, (int(tile_rows) // 8) * 8)
    half = ((m + 1) // 2 + 7) // 8 * 8
    tm = min(tm, max(half, 8))
    grid = -(-m // tm)
    rem = n4 - (grid - 1) * tm * _LANES   # valid elements within the last tile

    kernel = functools.partial(
        _bounded_iou_kernel, beta=float(beta), eps=float(eps), rem=rem, tm=tm,
        shifts=_swap_shifts(), has_weight=has_weight,
        reduce_only=(reduction != "none"))

    in_spec = pl.BlockSpec((tm, _LANES), lambda i: (i, 0))
    if reduction == "none":
        out_shape = jax.ShapeDtypeStruct((m, _LANES), jnp.float32)
        out_spec = pl.BlockSpec((tm, _LANES), lambda i: (i, 0))
    else:
        out_shape = jax.ShapeDtypeStruct((8, grid * _LANES), jnp.float32)
        out_spec = pl.BlockSpec((8, _LANES), lambda i: (0, i))

    out = pl.pallas_call(
        kernel,
        out_shape=out_shape,
        grid_spec=pltpu.PrefetchScalarGridSpec(
            num_scalar_prefetch=0,
            grid=(grid,),
            in_specs=[in_spec] * len(inputs),
            out_specs=out_spec),
        compiler_params=pltpu.CompilerParams(
            dimension_semantics=("parallel",),
            vmem_limit_bytes=32 * 1024 * 1024),
    )(*inputs)

    if reduction == "none":
        # Same interleaved layout as the input -> no transpose, just a slice
        # (a no-op copy when N % 32 == 0).
        return loss_weight * out.reshape(-1)[:n4].reshape(n, 4)

    total = jnp.sum(out)              # tiny (8, 128*grid) partial-sum reduce
    if reduction == "sum":
        return loss_weight * total
    denom = jnp.float32(n4) if avg_factor is None else jnp.float32(avg_factor)
    return loss_weight * total / denom


class BoundedIoULoss:
    """JAX/Pallas port of the PyTorch BoundedIoULoss module (forward only)."""

    def __init__(self, beta=0.2, eps=0.001, reduction="mean", loss_weight=1.0):
        self.beta = beta
        self.eps = eps
        self.reduction = reduction
        self.loss_weight = loss_weight

    def __call__(self, pred, target, weight=None, avg_factor=None,
                 reduction_override=None):
        # TODO(synk): torch's data-dependent early return `(pred * weight).sum()`
        # when weight has no positive entries needs a concrete-value branch and
        # is not reproduced; weight is otherwise fully supported.
        assert reduction_override in (None, "none", "mean", "sum")
        reduction = reduction_override if reduction_override else self.reduction
        return bounded_iou_loss_pallas(
            pred, target, weight, beta=self.beta, eps=self.eps,
            reduction=reduction, avg_factor=avg_factor,
            loss_weight=self.loss_weight)


def _reference_loss(pred, target, beta=0.2, eps=1e-3):
    """Pure-JAX reference of the elementwise torch loss (for sanity check)."""
    p, t = pred.astype(jnp.float32), target.astype(jnp.float32)
    pcx, pcy = (p[:, 0] + p[:, 2]) * 0.5, (p[:, 1] + p[:, 3]) * 0.5
    pw, ph = p[:, 2] - p[:, 0] + 1, p[:, 3] - p[:, 1] + 1
    tcx, tcy = (t[:, 0] + t[:, 2]) * 0.5, (t[:, 1] + t[:, 3]) * 0.5
    tw, th = t[:, 2] - t[:, 0] + 1, t[:, 3] - t[:, 1] + 1
    dx, dy = jnp.abs(tcx - pcx), jnp.abs(tcy - pcy)
    ldx = 1 - jnp.maximum((tw - 2 * dx) / (tw + 2 * dx + eps), 0.0)
    ldy = 1 - jnp.maximum((th - 2 * dy) / (th + 2 * dy + eps), 0.0)
    ldw = 1 - jnp.minimum(tw / (pw + eps), pw / (tw + eps))
    ldh = 1 - jnp.minimum(th / (ph + eps), ph / (th + eps))
    lc = jnp.stack([ldx, ldy, ldw, ldh], axis=-1)
    return jnp.where(lc < beta, 0.5 * lc * lc / beta, lc - 0.5 * beta)


def _random_boxes(key, n, scale):
    k1, k2 = jax.random.split(key)
    xy = jax.random.uniform(k1, (n, 2), jnp.float32) * scale
    wh = jax.random.uniform(k2, (n, 2), jnp.float32) * 5.0 + 1.0
    return jnp.concatenate([xy, xy + wh], axis=-1)


if __name__ == "__main__":
    key = jax.random.PRNGKey(0)
    kp, kt, kw, kw1, kbp, kbt = jax.random.split(key, 6)

    # small case (N=8 boxes of [x1, y1, x2, y2])
    n = 8
    pred = _random_boxes(kp, n, 10.0)
    target = _random_boxes(kt, n, 10.0)
    weight = jax.random.uniform(kw, (n, 4), jnp.float32) + 0.5
    weight1d = jax.random.uniform(kw1, (n,), jnp.float32) + 0.5

    loss_mod = BoundedIoULoss(beta=0.2, eps=0.001, reduction="mean",
                              loss_weight=1.0)

    loss_mean = loss_mod(pred, target)
    loss_sum = loss_mod(pred, target, reduction_override="sum")
    loss_none = loss_mod(pred, target, reduction_override="none")
    loss_w_none = loss_mod(pred, target, weight=weight,
                           reduction_override="none")
    loss_w_mean = loss_mod(pred, target, weight=weight)
    loss_w1_none = loss_mod(pred, target, weight=weight1d,
                            reduction_override="none")

    # N % 32 == 0 exercises the fully zero-copy input/output reshape path.
    n_mid = 256
    pred_mid = _random_boxes(kbp, n_mid, 20.0)
    target_mid = _random_boxes(kbt, n_mid, 20.0)
    mid_none = loss_mod(pred_mid, target_mid, reduction_override="none")
    mid_sum = loss_mod(pred_mid, target_mid, reduction_override="sum")

    # larger, non-aligned case exercising grid > 1 (megacore split), the
    # ragged last block and the pl.when-gated padding mask.
    n_big = 2000
    pred_big = _random_boxes(kbp, n_big, 50.0)
    target_big = _random_boxes(kbt, n_big, 50.0)
    big_mean = bounded_iou_loss_pallas(pred_big, target_big, beta=0.2,
                                       eps=0.001, reduction="mean")
    big_mean_small_tiles = bounded_iou_loss_pallas(
        pred_big, target_big, beta=0.2, eps=0.001, reduction="mean",
        tile_rows=8)

    jax.block_until_ready((loss_mean, loss_sum, loss_none, loss_w_none,
                           loss_w_mean, loss_w1_none, mid_none, mid_sum,
                           big_mean, big_mean_small_tiles))

    # sanity checks against a pure-JAX reference of the torch math
    ref_el = _reference_loss(pred, target, beta=0.2, eps=0.001)
    assert loss_none.shape == (n, 4)
    assert jnp.allclose(loss_none, ref_el, atol=1e-5, rtol=1e-5)
    assert jnp.allclose(loss_mean, ref_el.mean(), atol=1e-5, rtol=1e-5)
    assert jnp.allclose(loss_sum, ref_el.sum(), atol=1e-4, rtol=1e-5)
    assert jnp.allclose(loss_w_none, ref_el * weight, atol=1e-5, rtol=1e-5)
    assert jnp.allclose(loss_w_mean, (ref_el * weight).mean(),
                        atol=1e-5, rtol=1e-5)
    assert jnp.allclose(loss_w1_none, ref_el * weight1d[:, None],
                        atol=1e-5, rtol=1e-5)

    ref_mid = _reference_loss(pred_mid, target_mid, beta=0.2, eps=0.001)
    assert jnp.allclose(mid_none, ref_mid, atol=1e-5, rtol=1e-5)
    assert jnp.allclose(mid_sum, ref_mid.sum(), atol=1e-3, rtol=1e-4)

    ref_big = _reference_loss(pred_big, target_big, beta=0.2, eps=0.001)
    assert jnp.allclose(big_mean, ref_big.mean(), atol=1e-5, rtol=1e-4)
    assert jnp.allclose(big_mean_small_tiles, ref_big.mean(),
                        atol=1e-5, rtol=1e-4)

    print("KERNEL_OK")
</pallas_src>

<mosaic_0001>
module attributes {stable_mosaic.version = 11 : i64} {
  func.func @probe(%arg0: memref<8x128xf32, #tpu.memory_space<vmem>>, %arg1: memref<8x128xf32, #tpu.memory_space<vmem>>) attributes {dimension_semantics = [], scalar_prefetch = 0 : i64, scratch_operands = 0 : i64, tpu.core_type = #tpu.core_type<tc>} {
    %c0 = arith.constant 0 : index
    %c0_0 = arith.constant 0 : index
    %0 = vector.load %arg0[%c0, %c0_0] : memref<8x128xf32, #tpu.memory_space<vmem>>, vector<8x128xf32>
    %c1_i32 = arith.constant 1 : i32
    %1 = tpu.dynamic_rotate %0 by %c1_i32 dim 1 : vector<8x128xf32>, i32 -> vector<8x128xf32>
    %c0_1 = arith.constant 0 : index
    %c0_2 = arith.constant 0 : index
    %2 = vector.load %arg1[%c0_1, %c0_2] : memref<8x128xf32, #tpu.memory_space<vmem>>, vector<8x128xf32>
    tpu.vector_store %arg1[%c0_1, %c0_2], %1 {strides = array<i32>} : memref<8x128xf32, #tpu.memory_space<vmem>>, vector<8x128xf32>,
    return
  }
}

</mosaic_0001>

<bundles_post_ra>
// kernel: tpu_custom_call.1
= control target key start
LH: loop header
LB: loop body
LE: loop exit
PB: predicated region body
PF: predicated region fallthrough
CT: control target
= control target key end

     0   :  { %6 = vsyncpa [#allocation3], 0  ;;  %s128_s0 = inlined_call_operand.hbm [shape: f32[8,128], index: 0, kind: input, shape index: {}]   ;;  %s129_s1 = inlined_call_operand.hbm [shape: f32[8,128], index: 1, kind: output, shape index: {}]  }
   0x1   :  { %7 = vsyncpa [#allocation4], 0  ;;  %s91_s6 = smov [#allocation2]   ;;  %s43_s10 = scalar_lea.hbm %s128_s0, 128 }
   0x2   :  { %s14_s7 = sshll.u32 %s91_s6, 4  ;;  %p44_p0 = scmp.ne.s32.totalorder %s128_s0, %s43_s10  ;;  %s15_s7 = int_to_ptr.vmem [resolvable:$true] %s14_s7 }
   0x3   :  { %p47_p1 = scmp.lt.u32.totalorder %s43_s10, %s128_s0 }
   0x5   :  { %p49_p2 = pnand %p47_p1, %p44_p0 }
   0x7   :  { %52 = shalt.err (!%p49_p2)
}
   0x8   :  { %s53_s15 = scalar_lea.vmem %s15_s7, 128  ;;  %p58_p4 = scmp.lt.s32.totalorder %s15_s7, %s15_s7 }
   0x9   :  { %p54_p3 = scmp.ne.s32.totalorder %s15_s7, %s53_s15  ;;  %p59_p5 = scmp.lt.s32.totalorder %s53_s15, %s53_s15 }
   0xb   :  { %p60_p6 = por %p59_p5, %p58_p4 }
   0xd   :  { %p61_p7 = pnand %p60_p6, %p54_p3 }
   0xf   :  { %64 = shalt.err (!%p61_p7)
}
  0x10   :  { %17 = dma.hbm_to_vmem [thread:$0]  %s128_s0, 128, %s15_s7, [#allocation3]  }
  0x11   :  { %87 = dma.done.wait [#allocation3], 128  }
  0x12   :  { %88 = vsyncadd [#allocation3], 4294967168  ;;  %v21_v0 = vld [vmem:[#allocation2] sm:$0xff]  ;;  %s92_s18 = smov 1   ;;  %s93_s19 = smov [#allocation5]  }
  0x13   :  { %22 = vrot.lane.b32.xlu0 %v21_v0, %s92_s18  ;;  %s31_s20 = sshll.u32 %s93_s19, 4  ;;  %s32_s20 = int_to_ptr.vmem [resolvable:$true] %s31_s20 }
  0x14   :  { %s65_s21 = scalar_lea.vmem %s32_s20, 128  ;;  %p70_p9 = scmp.lt.s32.totalorder %s32_s20, %s32_s20 }
  0x15   :  { %p66_p8 = scmp.ne.s32.totalorder %s32_s20, %s65_s21  ;;  %p71_p10 = scmp.lt.s32.totalorder %s65_s21, %s65_s21 }
  0x17   :  { %p72_p11 = por %p71_p10, %p70_p9 }
  0x19   :  { %p73_p12 = pnand %p72_p11, %p66_p8 }
  0x85   :  { %v23_v1 = vpop.permute.xlu0 %22 }
  0x86   :  { %24 = vst [vmem:[#allocation5] sm:$0xff] %v23_v1 }
  0x87   :  { %76 = shalt.err (!%p73_p12)
}
  0x88   :  { %s77_s0 = scalar_lea.hbm %s129_s1, 128 }
  0x89   :  { %p78_p13 = scmp.ne.s32.totalorder %s129_s1, %s77_s0  ;;  %p81_p0 = scmp.lt.u32.totalorder %s77_s0, %s129_s1 }
  0x8b   :  { %p83_p1 = pnand %p81_p0, %p78_p13 }
  0x8d   :  { %86 = shalt.err (!%p83_p1)
}
  0x8e   :  { %34 = dma.vmem_to_hbm [thread:$0]  %s32_s20, 128, %s129_s1, [#allocation4]  }
  0x8f   :  { %89 = dma.done.wait [#allocation4], 128  }
  0x90   :  { %90 = vsyncadd [#allocation4], 4294967168 }
  0x91   :  { %38 = vsyncpa [#allocation3], 1 }
  0x92   :  { %39 = vsyncpa [#allocation4], 1 }

</bundles_post_ra>
